<compile_context>
chip_gen: v7x
topology: tpu7x:2x2x1
jax: 0.10.0
libtpu: 0.0.40
codegen_flags: <defaults>
</compile_context>

<pallas_src>
import functools

import jax
import jax.numpy as jnp
from jax.experimental import pallas as pl
from jax.experimental.pallas import tpu as pltpu

_LN_EPS = 1e-5


def _round_up(n, m):
    return ((n + m - 1) // m) * m


def _tpu_vmem_info():
    """(per-core VMEM bytes, detected?).  Conservative 64 MiB fallback."""
    try:
        info = pltpu.get_tpu_info()
        for name in ("vmem_capacity_bytes", "vmem_bytes", "vmem_capacity"):
            v = getattr(info, name, None)
            if v:
                return int(v), True
    except Exception:
        pass
    return 64 << 20, False


def _largest_divisor_tile(total, cap):
    """Largest multiple of 8 that divides `total` (a multiple of 8), <= cap."""
    cap = max(8, (min(total, cap) // 8) * 8)
    best, c = 8, 8
    while c <= cap:
        if total % c == 0:
            best = c
        c += 8
    return best


def _ln_rows(v, gamma, beta, n_real, n_pad):
    """Two-pass LayerNorm along lanes.  Assumes padded lanes of v are zero and
    gamma/beta are zero-padded (so padded lanes stay exactly zero).  The
    n_pad*mu^2 term removes the padded lanes' contribution to the centered
    sum of squares, keeping the statistics exact."""
    inv_n = 1.0 / n_real
    mu = jnp.sum(v, axis=-1, keepdims=True) * inv_n
    d = v - mu
    ss = jnp.sum(d * d, axis=-1, keepdims=True)
    if n_pad:
        ss = ss - float(n_pad) * (mu * mu)
    var = jnp.maximum(ss * inv_n, 0.0)
    return d * jax.lax.rsqrt(var + _LN_EPS) * gamma + beta


# ---------------------------------------------------------------------------
# Kernel 1: resident weights (whole bf16 w1/w2 in VMEM), 1-D batch grid.
# ---------------------------------------------------------------------------
def _gene_importance_kernel(
    x_ref,        # (TB, Gp)  f32 input tile (zero padded beyond B / G)
    gws_ref,      # (1, Gp)   sigmoid(global_weights), zero padded
    ln1_g_ref, ln1_b_ref,     # (1, Gp)
    w1_ref,       # (Gp, Hp)  bf16
    b1_ref,       # (1, Hp)
    ln2_g_ref, ln2_b_ref,     # (1, Hp)
    w2_ref,       # (Hp, Gp)  bf16
    b2_ref,       # (1, Gp)
    o_ref,        # (TB, Gp)
    *, n_genes, n_hidden, g_pad, h_pad):
    x = x_ref[...].astype(jnp.float32)

    h = _ln_rows(x, ln1_g_ref[...], ln1_b_ref[...], n_genes, g_pad)
    h = jnp.dot(h.astype(jnp.bfloat16), w1_ref[...],
                preferred_element_type=jnp.float32) + b1_ref[...]
    h = _ln_rows(h, ln2_g_ref[...], ln2_b_ref[...], n_hidden, h_pad)
    h = jnp.maximum(h, 0.0)
    # Dropout (p=0.1) is identity in eval mode.
    # TODO(synk): training-mode dropout (stateful PRNG mask) not implemented.
    ctx = jnp.dot(h.astype(jnp.bfloat16), w2_ref[...],
                  preferred_element_type=jnp.float32) + b2_ref[...]
    ctx = pl.reciprocal(1.0 + jnp.exp(-ctx), approx=True)   # sigmoid via EUP
    o_ref[...] = (x * (gws_ref[...] * ctx)).astype(o_ref.dtype)


def _make_resident_call(G, H, Gp, Hp, tile_b, Bp, out_dtype, vmem_limit):
    kernel = functools.partial(_gene_importance_kernel, n_genes=G, n_hidden=H,
                               g_pad=Gp - G, h_pad=Hp - H)

    def const(shape):
        return pl.BlockSpec(shape, lambda i: (0, 0))

    in_specs = [
        pl.BlockSpec((tile_b, Gp), lambda i: (i, 0)),   # x (streamed)
        const((1, Gp)),                                  # sigmoid(global_weights)
        const((1, Gp)), const((1, Gp)),                  # ln1 gamma / beta
        const((Gp, Hp)), const((1, Hp)),                 # linear1 (bf16 w, f32 b)
        const((1, Hp)), const((1, Hp)),                  # ln2 gamma / beta
        const((Hp, Gp)), const((1, Gp)),                 # linear2
    ]
    return pl.pallas_call(
        kernel,
        out_shape=jax.ShapeDtypeStruct((Bp, Gp), out_dtype),
        grid_spec=pltpu.PrefetchScalarGridSpec(
            num_scalar_prefetch=0,
            grid=(Bp // tile_b,),
            in_specs=in_specs,
            out_specs=pl.BlockSpec((tile_b, Gp), lambda i: (i, 0)),
        ),
        compiler_params=pltpu.CompilerParams(
            dimension_semantics=("parallel",),
            vmem_limit_bytes=vmem_limit,
        ),
    )


# ---------------------------------------------------------------------------
# Kernel 2: streamed weights for large G*H (v7x-class VMEM).  Second grid axis
# t in [0, 2*n_h): phase 1 (t < n_h) streams w1 column-chunks and builds the
# hidden activations; phase 2 streams w2 row-chunks and accumulates ctx.
# ---------------------------------------------------------------------------
def _gene_importance_chunked_kernel(
    x_ref,        # (TB, Gp)   resident for the whole t-loop
    gws_ref,      # (1, Gp)
    ln1_g_ref, ln1_b_ref,      # (1, Gp)
    w1_ref,       # (Gp, Th)   bf16 column chunk of w1
    b1_ref,       # (1, Th)
    ln2_g_ref, ln2_b_ref,      # (1, Th)
    w2_ref,       # (Th, Gp)   bf16 row chunk of w2
    b2_ref,       # (1, Gp)
    o_ref,        # (TB, Gp)
    xn_ref,       # (TB, Gp)   f32 scratch: LN1-normalized x
    h_ref,        # (n_h, TB, Th) f32 scratch: hidden pre-LN2
    s1_ref,       # (TB, 1)    f32 scratch: sum(h)  -> mean
    s2_ref,       # (TB, 1)    f32 scratch: sum(h^2)-> rstd
    acc_ref,      # (TB, Gp)   f32 scratch: ctx logits accumulator
    *, n_genes, n_hidden, g_pad, n_hchunks):
    t = pl.program_id(1)

    @pl.when(t == 0)
    def _():
        x = x_ref[...].astype(jnp.float32)
        xn_ref[...] = _ln_rows(x, ln1_g_ref[...], ln1_b_ref[...],
                               n_genes, g_pad)
        s1_ref[...] = jnp.zeros_like(s1_ref)
        s2_ref[...] = jnp.zeros_like(s2_ref)

    @pl.when(t < n_hchunks)
    def _():
        h = jnp.dot(xn_ref[...].astype(jnp.bfloat16), w1_ref[...],
                    preferred_element_type=jnp.float32) + b1_ref[...]
        h_ref[t] = h
        s1_ref[...] += jnp.sum(h, axis=-1, keepdims=True)
        s2_ref[...] += jnp.sum(h * h, axis=-1, keepdims=True)

    @pl.when(t == n_hchunks)
    def _():
        # LN2 stats from accumulated sums (padded hidden lanes are exactly
        # zero, so sums are exact; one-pass here, clamp guards cancellation).
        inv_h = 1.0 / n_hidden
        mu = s1_ref[...] * inv_h
        var = jnp.maximum(s2_ref[...] * inv_h - mu * mu, 0.0)
        s1_ref[...] = mu                                  # reuse as mean
        s2_ref[...] = jax.lax.rsqrt(var + _LN_EPS)        # reuse as rstd
        acc_ref[...] = jnp.zeros_like(acc_ref)

    @pl.when(t >= n_hchunks)
    def _():
        hi = t - n_hchunks
        hc = (h_ref[hi] - s1_ref[...]) * s2_ref[...]
        hc = hc * ln2_g_ref[...] + ln2_b_ref[...]
        hc = jnp.maximum(hc, 0.0)
        # TODO(synk): training-mode dropout (stateful PRNG mask) not implemented.
        acc_ref[...] += jnp.dot(hc.astype(jnp.bfloat16), w2_ref[...],
                                preferred_element_type=jnp.float32)

    @pl.when(t == 2 * n_hchunks - 1)
    def _():
        ctx = acc_ref[...] + b2_ref[...]
        ctx = pl.reciprocal(1.0 + jnp.exp(-ctx), approx=True)
        x = x_ref[...].astype(jnp.float32)
        o_ref[...] = (x * (gws_ref[...] * ctx)).astype(o_ref.dtype)


def _make_chunked_call(G, H, Gp, Hp, tile_b, Bp, tile_h, out_dtype, vmem_limit):
    n_h = Hp // tile_h
    kernel = functools.partial(_gene_importance_chunked_kernel, n_genes=G,
                               n_hidden=H, g_pad=Gp - G, n_hchunks=n_h)

    xo_idx = lambda i, t: (i, 0)
    const = lambda i, t: (0, 0)
    w1_idx = lambda i, t: (0, jnp.minimum(t, n_h - 1))     # phase-1 chunk
    b1_idx = lambda i, t: (0, jnp.minimum(t, n_h - 1))
    ln2_idx = lambda i, t: (0, jnp.maximum(t - n_h, 0))    # phase-2 chunk
    w2_idx = lambda i, t: (jnp.maximum(t - n_h, 0), 0)

    in_specs = [
        pl.BlockSpec((tile_b, Gp), xo_idx),    # x (resident per batch tile)
        pl.BlockSpec((1, Gp), const),          # sigmoid(global_weights)
        pl.BlockSpec((1, Gp), const),          # ln1 gamma
        pl.BlockSpec((1, Gp), const),          # ln1 beta
        pl.BlockSpec((Gp, tile_h), w1_idx),    # w1 column chunk (streamed)
        pl.BlockSpec((1, tile_h), b1_idx),     # b1 chunk
        pl.BlockSpec((1, tile_h), ln2_idx),    # ln2 gamma chunk
        pl.BlockSpec((1, tile_h), ln2_idx),    # ln2 beta chunk
        pl.BlockSpec((tile_h, Gp), w2_idx),    # w2 row chunk (streamed)
        pl.BlockSpec((1, Gp), const),          # b2
    ]
    scratch = [
        pltpu.VMEM((tile_b, Gp), jnp.float32),            # LN1-normalized x
        pltpu.VMEM((n_h, tile_b, tile_h), jnp.float32),   # hidden pre-LN2
        pltpu.VMEM((tile_b, 1), jnp.float32),             # sum  -> mean
        pltpu.VMEM((tile_b, 1), jnp.float32),             # sumsq-> rstd
        pltpu.VMEM((tile_b, Gp), jnp.float32),            # ctx logits acc
    ]
    return pl.pallas_call(
        kernel,
        out_shape=jax.ShapeDtypeStruct((Bp, Gp), out_dtype),
        grid_spec=pltpu.PrefetchScalarGridSpec(
            num_scalar_prefetch=0,
            grid=(Bp // tile_b, 2 * n_h),
            in_specs=in_specs,
            out_specs=pl.BlockSpec((tile_b, Gp), xo_idx),
            scratch_shapes=scratch,
        ),
        compiler_params=pltpu.CompilerParams(
            dimension_semantics=("parallel", "arbitrary"),
            vmem_limit_bytes=vmem_limit,
        ),
    )


# ---------------------------------------------------------------------------
# Wrapper
# ---------------------------------------------------------------------------
def prepare_params(params):
    """Pad features to multiples of 128 and cast weights to bf16 ONCE (outside
    the per-call path).  Padded entries of gamma/beta/bias/global-weights are
    zero -- the kernels rely on this invariant for exact LN statistics and for
    killing the sigmoid(0)=0.5 context at padded gene lanes."""
    G, H = params["w1"].shape
    Gp = max(_round_up(G, 128), 128)
    Hp = max(_round_up(H, 128), 128)
    f32 = jnp.float32

    def row(v, n):
        v = v.astype(f32)
        return jnp.pad(v, (0, n - v.shape[0])).reshape(1, n)

    def mat(m, r, c):
        m = m.astype(jnp.bfloat16)
        return jnp.pad(m, ((0, r - m.shape[0]), (0, c - m.shape[1])))

    return {
        "n_genes": G, "n_hidden": H, "Gp": Gp, "Hp": Hp,
        "gws": row(jax.nn.sigmoid(params["global_weights"].astype(f32)), Gp),
        "ln1_g": row(params["ln1_gamma"], Gp),
        "ln1_b": row(params["ln1_beta"], Gp),
        "w1": mat(params["w1"], Gp, Hp),
        "b1": row(params["b1"], Hp),
        "ln2_g": row(params["ln2_gamma"], Hp),
        "ln2_b": row(params["ln2_beta"], Hp),
        "w2": mat(params["w2"], Hp, Gp),
        "b2": row(params["b2"], Gp),
    }


def gene_importance_forward(x, params, *, tile_b=None, tile_h=None,
                            out_dtype=None, force_chunked=False):
    """Eval-mode forward.  x: (batch, n_genes).  `params` may be the raw dict
    from init_params() or (preferred) the cached output of prepare_params()."""
    if "Gp" not in params:
        params = prepare_params(params)

    B, G = x.shape
    if G != params["n_genes"]:
        raise ValueError("x feature dim does not match params")
    H, Gp, Hp = params["n_hidden"], params["Gp"], params["Hp"]
    out_dtype = jnp.dtype(out_dtype) if out_dtype is not None else x.dtype

    phys_vmem, vmem_known = _tpu_vmem_info()
    vmem_cap = max(32 << 20, min(phys_vmem - (phys_vmem >> 3), 112 << 20))
    headroom = 4 << 20

    # Default pipeline double-buffers every spec; constant-index weight blocks
    # are DMA'd only once but cost two VMEM buffers each.
    weight_vmem = 2 * (Gp * Hp + Hp * Gp) * 2
    row_vmem = 2 * 4 * (4 * Gp + 3 * Hp)
    use_chunked = bool(force_chunked) or (
        weight_vmem + row_vmem > (vmem_cap - headroom) * 2 // 3)

    if use_chunked:
        if tile_h is None:
            tile_h = 128
            for cand in (2048, 1024, 512, 256):
                if Hp % cand == 0 and 8 * Gp * cand <= (vmem_cap - headroom) // 2:
                    tile_h = cand
                    break
        if Hp % tile_h != 0 or tile_h % 128 != 0:
            raise ValueError("tile_h must be a multiple of 128 dividing padded H")
        chunk_vmem = 2 * (Gp * tile_h + tile_h * Gp) * 2
        per_row = 32 * Gp + 4 * Hp
        budget = vmem_cap - headroom - chunk_vmem - row_vmem
    else:
        per_row = 28 * Gp + 12 * Hp
        budget = vmem_cap - headroom - weight_vmem - row_vmem

    cap_rows = min(max(8, budget // per_row), 512)
    Bp8 = _round_up(B, 8)

    if tile_b is None:
        tile_b = _largest_divisor_tile(Bp8, cap_rows)
        # Only on detected 2-TensorCore chips (v7x-class, 64 MiB VMEM) split
        # the batch across cores, and only when activation HBM traffic clearly
        # dominates the (per-core duplicated) weight traffic.
        weight_hbm = (Gp * Hp + Hp * Gp) * 2
        if (vmem_known and phys_vmem <= (64 << 20) and not use_chunked
                and Bp8 // tile_b < 2 and Bp8 >= 16
                and Bp8 * Gp * 8 > 4 * weight_hbm):
            tile_b = _largest_divisor_tile(Bp8, Bp8 // 2)
    tile_b = max(8, _round_up(int(tile_b), 8))
    Bp = _round_up(B, tile_b)

    x32 = x.astype(jnp.float32)
    if Bp != B or Gp != G:      # skip the extra HBM pass when already aligned
        x32 = jnp.pad(x32, ((0, Bp - B), (0, Gp - G)))

    args = (x32, params["gws"], params["ln1_g"], params["ln1_b"],
            params["w1"], params["b1"], params["ln2_g"], params["ln2_b"],
            params["w2"], params["b2"])

    if use_chunked:
        call = _make_chunked_call(G, H, Gp, Hp, tile_b, Bp, tile_h,
                                  out_dtype, int(vmem_cap))
    else:
        call = _make_resident_call(G, H, Gp, Hp, tile_b, Bp,
                                   out_dtype, int(vmem_cap))
    out = call(*args)
    if Bp != B or Gp != G:
        out = out[:B, :G]
    return out


# ---------------------------------------------------------------------------
# Synthetic init + pure-JAX reference + self-test
# ---------------------------------------------------------------------------
def init_params(key, n_genes, n_hidden):
    """Deterministic synthetic init matching the PyTorch module's shapes."""
    k1, k2, k3, k4 = jax.random.split(key, 4)
    bound1 = 1.0 / jnp.sqrt(n_genes)
    bound2 = 1.0 / jnp.sqrt(n_hidden)
    return {
        "global_weights": jnp.ones((n_genes,), jnp.float32),
        "ln1_gamma": jnp.ones((n_genes,), jnp.float32),
        "ln1_beta": jnp.zeros((n_genes,), jnp.float32),
        "w1": jax.random.uniform(k1, (n_genes, n_hidden), jnp.float32,
                                 -bound1, bound1),
        "b1": jax.random.uniform(k2, (n_hidden,), jnp.float32, -bound1, bound1),
        "ln2_gamma": jnp.ones((n_hidden,), jnp.float32),
        "ln2_beta": jnp.zeros((n_hidden,), jnp.float32),
        "w2": jax.random.uniform(k3, (n_hidden, n_genes), jnp.float32,
                                 -bound2, bound2),
        "b2": jax.random.uniform(k4, (n_genes,), jnp.float32, -bound2, bound2),
    }


def _reference(x, p):
    """Pure-JAX f32 reference of the PyTorch forward (eval mode)."""
    def ln(v, g, b):
        mu = jnp.mean(v, -1, keepdims=True)
        var = jnp.mean((v - mu) ** 2, -1, keepdims=True)
        return (v - mu) * jax.lax.rsqrt(var + _LN_EPS) * g + b

    h = ln(x, p["ln1_gamma"], p["ln1_beta"])
    h = h @ p["w1"] + p["b1"]
    h = ln(h, p["ln2_gamma"], p["ln2_beta"])
    h = jnp.maximum(h, 0.0)
    ctx = jax.nn.sigmoid(h @ p["w2"] + p["b2"])
    gw = jax.nn.sigmoid(p["global_weights"])
    return x * (gw * ctx)


if __name__ == "__main__":
    root = jax.random.PRNGKey(0)

    cases = [
        # no-pad fast path (G, B already aligned), resident weights
        dict(batch=16, n_genes=256, n_hidden=128),
        # padded path (tiny G/H), resident weights
        dict(batch=8, n_genes=32, n_hidden=32),
        # streamed-weight (chunked) path, forced small to exercise it
        dict(batch=16, n_genes=256, n_hidden=256, force_chunked=True,
             tile_h=128),
    ]

    for idx, case in enumerate(cases):
        batch = case.pop("batch")
        n_genes = case.pop("n_genes")
        n_hidden = case.pop("n_hidden")
        kx, kp = jax.random.split(jax.random.fold_in(root, idx))
        x = jax.random.normal(kx, (batch, n_genes), jnp.float32)
        params = init_params(kp, n_genes, n_hidden)
        prepared = prepare_params(params)   # pad/cast once, reuse across calls

        out = jax.block_until_ready(gene_importance_forward(x, prepared, **case))
        ref = _reference(x, params)

        assert out.shape == (batch, n_genes), f"case {idx}: bad shape"
        # bf16 matmul inputs (f32 accumulation) + approx reciprocal loosen
        # tolerance vs the pure-f32 reference.
        assert jnp.allclose(out, ref, atol=3e-2, rtol=3e-2), \
            f"case {idx}: mismatch vs reference"

    print("KERNEL_OK")
</pallas_src>

<mosaic_0001>
module attributes {stable_mosaic.version = 11 : i64} {
  func.func @_gene_importance_kernel(%arg0: i32, %arg1: memref<16x256xf32, #tpu.memory_space<vmem>>, %arg2: memref<1x256xf32, #tpu.memory_space<vmem>>, %arg3: memref<1x256xf32, #tpu.memory_space<vmem>>, %arg4: memref<1x256xf32, #tpu.memory_space<vmem>>, %arg5: memref<256x128xbf16, #tpu.memory_space<vmem>>, %arg6: memref<1x128xf32, #tpu.memory_space<vmem>>, %arg7: memref<1x128xf32, #tpu.memory_space<vmem>>, %arg8: memref<1x128xf32, #tpu.memory_space<vmem>>, %arg9: memref<128x256xbf16, #tpu.memory_space<vmem>>, %arg10: memref<1x256xf32, #tpu.memory_space<vmem>>, %arg11: memref<16x256xf32, #tpu.memory_space<vmem>>) attributes {dimension_semantics = [#tpu.dimension_semantics<parallel>], iteration_bounds = array<i64: 1>, scalar_prefetch = 0 : i64, scratch_operands = 0 : i64, tpu.core_type = #tpu.core_type<tc>, window_params = [{transform_indices = @transform_0, window_bounds = array<i64: 16, 256>}, {pipeline_mode = #tpu.pipeline_mode<synchronous>, transform_indices = @transform_1, window_bounds = array<i64: 1, 256>}, {pipeline_mode = #tpu.pipeline_mode<synchronous>, transform_indices = @transform_2, window_bounds = array<i64: 1, 256>}, {pipeline_mode = #tpu.pipeline_mode<synchronous>, transform_indices = @transform_3, window_bounds = array<i64: 1, 256>}, {pipeline_mode = #tpu.pipeline_mode<synchronous>, transform_indices = @transform_4, window_bounds = array<i64: 256, 128>}, {pipeline_mode = #tpu.pipeline_mode<synchronous>, transform_indices = @transform_5, window_bounds = array<i64: 1, 128>}, {pipeline_mode = #tpu.pipeline_mode<synchronous>, transform_indices = @transform_6, window_bounds = array<i64: 1, 128>}, {pipeline_mode = #tpu.pipeline_mode<synchronous>, transform_indices = @transform_7, window_bounds = array<i64: 1, 128>}, {pipeline_mode = #tpu.pipeline_mode<synchronous>, transform_indices = @transform_8, window_bounds = array<i64: 128, 256>}, {pipeline_mode = #tpu.pipeline_mode<synchronous>, transform_indices = @transform_9, window_bounds = array<i64: 1, 256>}, {transform_indices = @transform_10, window_bounds = array<i64: 16, 256>}]} {
    %c0 = arith.constant 0 : index
    %c0_0 = arith.constant 0 : index
    %0 = vector.load %arg1[%c0, %c0_0] : memref<16x256xf32, #tpu.memory_space<vmem>>, vector<16x256xf32>
    %c0_1 = arith.constant 0 : index
    %c0_2 = arith.constant 0 : index
    %1 = vector.load %arg3[%c0_1, %c0_2] : memref<1x256xf32, #tpu.memory_space<vmem>>, vector<1x256xf32>
    %c0_3 = arith.constant 0 : index
    %c0_4 = arith.constant 0 : index
    %2 = vector.load %arg4[%c0_3, %c0_4] : memref<1x256xf32, #tpu.memory_space<vmem>>, vector<1x256xf32>
    %cst = arith.constant dense<0.000000e+00> : vector<16xf32>
    %3 = vector.multi_reduction <add>, %0, %cst [1] : vector<16x256xf32> to vector<16xf32>
    %4 = vector.shape_cast %3 : vector<16xf32> to vector<16x1xf32>
    %cst_5 = arith.constant 3.906250e-03 : f32
    %5 = vector.broadcast %cst_5 : f32 to vector<16x1xf32>
    %6 = arith.mulf %4, %5 : vector<16x1xf32>
    %7 = vector.broadcast %6 : vector<16x1xf32> to vector<16x256xf32>
    %8 = arith.subf %0, %7 : vector<16x256xf32>
    %9 = arith.mulf %8, %8 : vector<16x256xf32>
    %cst_6 = arith.constant dense<0.000000e+00> : vector<16xf32>
    %10 = vector.multi_reduction <add>, %9, %cst_6 [1] : vector<16x256xf32> to vector<16xf32>
    %11 = vector.shape_cast %10 : vector<16xf32> to vector<16x1xf32>
    %cst_7 = arith.constant 3.906250e-03 : f32
    %12 = vector.broadcast %cst_7 : f32 to vector<16x1xf32>
    %13 = arith.mulf %11, %12 : vector<16x1xf32>
    %cst_8 = arith.constant 0.000000e+00 : f32
    %14 = vector.broadcast %cst_8 : f32 to vector<16x1xf32>
    %15 = arith.maximumf %13, %14 : vector<16x1xf32>
    %cst_9 = arith.constant 9.99999974E-6 : f32
    %16 = vector.broadcast %cst_9 : f32 to vector<16x1xf32>
    %17 = arith.addf %15, %16 : vector<16x1xf32>
    %18 = math.rsqrt %17 : vector<16x1xf32>
    %19 = vector.broadcast %18 : vector<16x1xf32> to vector<16x256xf32>
    %20 = arith.mulf %8, %19 : vector<16x256xf32>
    %21 = vector.broadcast %1 : vector<1x256xf32> to vector<16x256xf32>
    %22 = arith.mulf %20, %21 : vector<16x256xf32>
    %23 = vector.broadcast %2 : vector<1x256xf32> to vector<16x256xf32>
    %24 = arith.addf %22, %23 : vector<16x256xf32>
    %25 = arith.truncf %24 : vector<16x256xf32> to vector<16x256xbf16>
    %c0_10 = arith.constant 0 : index
    %c0_11 = arith.constant 0 : index
    %26 = vector.load %arg5[%c0_10, %c0_11] : memref<256x128xbf16, #tpu.memory_space<vmem>>, vector<256x128xbf16>
    %cst_12 = arith.constant dense<0.000000e+00> : vector<16x128xf32>
    %27 = tpu.matmul %25, %26, %cst_12 {dimension_numbers = #tpu.dot_dimension_numbers<[1], [0], [0], [1], [0, 0, 1, 1], [], []>} : vector<16x256xbf16>, vector<256x128xbf16>, vector<16x128xf32> -> vector<16x128xf32>
    %c0_13 = arith.constant 0 : index
    %c0_14 = arith.constant 0 : index
    %28 = vector.load %arg6[%c0_13, %c0_14] : memref<1x128xf32, #tpu.memory_space<vmem>>, vector<1x128xf32>
    %29 = vector.broadcast %28 : vector<1x128xf32> to vector<16x128xf32>
    %30 = arith.addf %27, %29 : vector<16x128xf32>
    %c0_15 = arith.constant 0 : index
    %c0_16 = arith.constant 0 : index
    %31 = vector.load %arg7[%c0_15, %c0_16] : memref<1x128xf32, #tpu.memory_space<vmem>>, vector<1x128xf32>
    %c0_17 = arith.constant 0 : index
    %c0_18 = arith.constant 0 : index
    %32 = vector.load %arg8[%c0_17, %c0_18] : memref<1x128xf32, #tpu.memory_space<vmem>>, vector<1x128xf32>
    %cst_19 = arith.constant dense<0.000000e+00> : vector<16xf32>
    %33 = vector.multi_reduction <add>, %30, %cst_19 [1] : vector<16x128xf32> to vector<16xf32>
    %34 = vector.shape_cast %33 : vector<16xf32> to vector<16x1xf32>
    %cst_20 = arith.constant 7.812500e-03 : f32
    %35 = vector.broadcast %cst_20 : f32 to vector<16x1xf32>
    %36 = arith.mulf %34, %35 : vector<16x1xf32>
    %37 = vector.broadcast %36 : vector<16x1xf32> to vector<16x128xf32>
    %38 = arith.subf %30, %37 : vector<16x128xf32>
    %39 = arith.mulf %38, %38 : vector<16x128xf32>
    %cst_21 = arith.constant dense<0.000000e+00> : vector<16xf32>
    %40 = vector.multi_reduction <add>, %39, %cst_21 [1] : vector<16x128xf32> to vector<16xf32>
    %41 = vector.shape_cast %40 : vector<16xf32> to vector<16x1xf32>
    %cst_22 = arith.constant 7.812500e-03 : f32
    %42 = vector.broadcast %cst_22 : f32 to vector<16x1xf32>
    %43 = arith.mulf %41, %42 : vector<16x1xf32>
    %cst_23 = arith.constant 0.000000e+00 : f32
    %44 = vector.broadcast %cst_23 : f32 to vector<16x1xf32>
    %45 = arith.maximumf %43, %44 : vector<16x1xf32>
    %cst_24 = arith.constant 9.99999974E-6 : f32
    %46 = vector.broadcast %cst_24 : f32 to vector<16x1xf32>
    %47 = arith.addf %45, %46 : vector<16x1xf32>
    %48 = math.rsqrt %47 : vector<16x1xf32>
    %49 = vector.broadcast %48 : vector<16x1xf32> to vector<16x128xf32>
    %50 = arith.mulf %38, %49 : vector<16x128xf32>
    %51 = vector.broadcast %31 : vector<1x128xf32> to vector<16x128xf32>
    %52 = arith.mulf %50, %51 : vector<16x128xf32>
    %53 = vector.broadcast %32 : vector<1x128xf32> to vector<16x128xf32>
    %54 = arith.addf %52, %53 : vector<16x128xf32>
    %cst_25 = arith.constant 0.000000e+00 : f32
    %55 = vector.broadcast %cst_25 : f32 to vector<16x128xf32>
    %56 = arith.maximumf %54, %55 : vector<16x128xf32>
    %57 = arith.truncf %56 : vector<16x128xf32> to vector<16x128xbf16>
    %c0_26 = arith.constant 0 : index
    %c0_27 = arith.constant 0 : index
    %58 = vector.load %arg9[%c0_26, %c0_27] : memref<128x256xbf16, #tpu.memory_space<vmem>>, vector<128x256xbf16>
    %cst_28 = arith.constant dense<0.000000e+00> : vector<16x256xf32>
    %59 = tpu.matmul %57, %58, %cst_28 {dimension_numbers = #tpu.dot_dimension_numbers<[1], [0], [0], [1], [0, 0, 1, 1], [], []>} : vector<16x128xbf16>, vector<128x256xbf16>, vector<16x256xf32> -> vector<16x256xf32>
    %c0_29 = arith.constant 0 : index
    %c0_30 = arith.constant 0 : index
    %60 = vector.load %arg10[%c0_29, %c0_30] : memref<1x256xf32, #tpu.memory_space<vmem>>, vector<1x256xf32>
    %61 = vector.broadcast %60 : vector<1x256xf32> to vector<16x256xf32>
    %62 = arith.addf %59, %61 : vector<16x256xf32>
    %cst_31 = arith.constant 0.000000e+00 : f32
    %63 = vector.broadcast %cst_31 : f32 to vector<16x256xf32>
    %64 = arith.subf %63, %62 : vector<16x256xf32>
    %65 = math.exp %64 : vector<16x256xf32>
    %cst_32 = arith.constant 1.000000e+00 : f32
    %66 = vector.broadcast %cst_32 : f32 to vector<16x256xf32>
    %67 = arith.addf %66, %65 : vector<16x256xf32>
    %68 = tpu.reciprocal %67 {approx = true} : vector<16x256xf32> -> vector<16x256xf32>
    %c0_33 = arith.constant 0 : index
    %c0_34 = arith.constant 0 : index
    %69 = vector.load %arg2[%c0_33, %c0_34] : memref<1x256xf32, #tpu.memory_space<vmem>>, vector<1x256xf32>
    %70 = vector.broadcast %69 : vector<1x256xf32> to vector<16x256xf32>
    %71 = arith.mulf %70, %68 : vector<16x256xf32>
    %72 = arith.mulf %0, %71 : vector<16x256xf32>
    %c0_35 = arith.constant 0 : index
    %c0_36 = arith.constant 0 : index
    %73 = vector.load %arg11[%c0_35, %c0_36] : memref<16x256xf32, #tpu.memory_space<vmem>>, vector<16x256xf32>
    tpu.vector_store %arg11[%c0_35, %c0_36], %72 {strides = array<i32>} : memref<16x256xf32, #tpu.memory_space<vmem>>, vector<16x256xf32>,
    return
  }
  func.func @transform_0(%arg0: i32) -> (i32, i32) {
    %c0_i32 = arith.constant 0 : i32
    %c0_i32_0 = arith.constant 0 : i32
    return %arg0, %c0_i32 : i32, i32
  }
  func.func @transform_1(%arg0: i32) -> (i32, i32) {
    %c0_i32 = arith.constant 0 : i32
    %c0_i32_0 = arith.constant 0 : i32
    %c0_i32_1 = arith.constant 0 : i32
    return %c0_i32, %c0_i32_0 : i32, i32
  }
  func.func @transform_2(%arg0: i32) -> (i32, i32) {
    %c0_i32 = arith.constant 0 : i32
    %c0_i32_0 = arith.constant 0 : i32
    %c0_i32_1 = arith.constant 0 : i32
    return %c0_i32, %c0_i32_0 : i32, i32
  }
  func.func @transform_3(%arg0: i32) -> (i32, i32) {
    %c0_i32 = arith.constant 0 : i32
    %c0_i32_0 = arith.constant 0 : i32
    %c0_i32_1 = arith.constant 0 : i32
    return %c0_i32, %c0_i32_0 : i32, i32
  }
  func.func @transform_4(%arg0: i32) -> (i32, i32) {
    %c0_i32 = arith.constant 0 : i32
    %c0_i32_0 = arith.constant 0 : i32
    %c0_i32_1 = arith.constant 0 : i32
    return %c0_i32, %c0_i32_0 : i32, i32
  }
  func.func @transform_5(%arg0: i32) -> (i32, i32) {
    %c0_i32 = arith.constant 0 : i32
    %c0_i32_0 = arith.constant 0 : i32
    %c0_i32_1 = arith.constant 0 : i32
    return %c0_i32, %c0_i32_0 : i32, i32
  }
  func.func @transform_6(%arg0: i32) -> (i32, i32) {
    %c0_i32 = arith.constant 0 : i32
    %c0_i32_0 = arith.constant 0 : i32
    %c0_i32_1 = arith.constant 0 : i32
    return %c0_i32, %c0_i32_0 : i32, i32
  }
  func.func @transform_7(%arg0: i32) -> (i32, i32) {
    %c0_i32 = arith.constant 0 : i32
    %c0_i32_0 = arith.constant 0 : i32
    %c0_i32_1 = arith.constant 0 : i32
    return %c0_i32, %c0_i32_0 : i32, i32
  }
  func.func @transform_8(%arg0: i32) -> (i32, i32) {
    %c0_i32 = arith.constant 0 : i32
    %c0_i32_0 = arith.constant 0 : i32
    %c0_i32_1 = arith.constant 0 : i32
    return %c0_i32, %c0_i32_0 : i32, i32
  }
  func.func @transform_9(%arg0: i32) -> (i32, i32) {
    %c0_i32 = arith.constant 0 : i32
    %c0_i32_0 = arith.constant 0 : i32
    %c0_i32_1 = arith.constant 0 : i32
    return %c0_i32, %c0_i32_0 : i32, i32
  }
  func.func @transform_10(%arg0: i32) -> (i32, i32) {
    %c0_i32 = arith.constant 0 : i32
    %c0_i32_0 = arith.constant 0 : i32
    return %arg0, %c0_i32 : i32, i32
  }
}

</mosaic_0001>

<bundles_post_ra>
// kernel: tpu_custom_call.1
= control target key start
LH: loop header
LB: loop body
LE: loop exit
PB: predicated region body
PF: predicated region fallthrough
CT: control target
= control target key end

     0   :  { %15 = vsyncpa [#allocation3], 0  ;;  %s983_s0 = inlined_call_operand.hbm [shape: f32[16,256], index: 0, kind: input, shape index: {}]   ;;  %s984_s1 = inlined_call_operand.vmem [shape: f32[1,256], index: 1, kind: input, shape index: {}]   ;;  %s985_s2 = inlined_call_operand.vmem [shape: f32[1,256], index: 2, kind: input, shape index: {}]   ;;  %s986_s3 = inlined_call_operand.vmem [shape: f32[1,256], index: 3, kind: input, shape index: {}]   ;;  %s987_s4 = inlined_call_operand.hbm [shape: bf16[256,128], index: 4, kind: input, shape index: {}]   ;;  %s988_s5 = inlined_call_operand.vmem [shape: f32[1,128], index: 5, kind: input, shape index: {}]   ;;  %s989_s6 = inlined_call_operand.vmem [shape: f32[1,128], index: 6, kind: input, shape index: {}]   ;;  %s990_s7 = inlined_call_operand.vmem [shape: f32[1,128], index: 7, kind: input, shape index: {}]   ;;  %s991_s8 = inlined_call_operand.hbm [shape: bf16[128,256], index: 8, kind: input, shape index: {}]   ;;  %s992_s9 = inlined_call_operand.vmem [shape: f32[1,256], index: 9, kind: input, shape index: {}]   ;;  %s993_s10 = inlined_call_operand.hbm [shape: f32[16,256], index: 10, kind: output, shape index: {}]  }
   0x1   :  { %16 = vsyncpa [#allocation6], 0 }
   0x2   :  { %17 = vsyncpa [#allocation4], 0  ;;  %s810_s13 = smov [#allocation5]   ;;  %s716_s17 = scalar_lea.hbm %s987_s4, 2048 }
   0x3   :  { %s41_s14 = sshll.u32 %s810_s13, 4  ;;  %p717_p0 = scmp.ne.s32.totalorder %s987_s4, %s716_s17  ;;  %s42_s14 = int_to_ptr.vmem [resolvable:$true] %s41_s14 }
   0x4   :  { %p720_p1 = scmp.lt.u32.totalorder %s716_s17, %s987_s4 }
   0x6   :  { %p722_p2 = pnand %p720_p1, %p717_p0 }
   0x8   :  { %725 = shalt.err (!%p722_p2)
}
   0x9   :  { %s726_s22 = scalar_lea.vmem %s42_s14, 2048  ;;  %p731_p4 = scmp.lt.s32.totalorder %s42_s14, %s42_s14 }
   0xa   :  { %p727_p3 = scmp.ne.s32.totalorder %s42_s14, %s726_s22  ;;  %p732_p5 = scmp.lt.s32.totalorder %s726_s22, %s726_s22 }
   0xc   :  { %p733_p6 = por %p732_p5, %p731_p4 }
   0xe   :  { %p734_p7 = pnand %p733_p6, %p727_p3 }
  0x10   :  { %737 = shalt.err (!%p734_p7)
}
  0x11   :  { %s811_s23 = smov 64   ;;  %s812_s24 = smov 4  }
  0x12   :  { %47 = dma.hbm_to_vmem [thread:$0]  %s987_s4, 2048, %s42_s14, [#allocation6], %s811_s23, %s811_s23, %s812_s24  }
  0x13   :  { %s813_s27 = smov [#allocation2]   ;;  %s738_s11 = scalar_lea.hbm %s983_s0, 512 }
  0x14   :  { %s23_s28 = sshll.u32 %s813_s27, 4  ;;  %p739_p8 = scmp.ne.s32.totalorder %s983_s0, %s738_s11  ;;  %s24_s28 = int_to_ptr.vmem [resolvable:$true] %s23_s28 }
  0x15   :  { %p742_p9 = scmp.lt.u32.totalorder %s738_s11, %s983_s0 }
  0x17   :  { %p744_p10 = pnand %p742_p9, %p739_p8 }
  0x19   :  { %747 = shalt.err (!%p744_p10)
}
  0x1a   :  { %s748_s17 = scalar_lea.vmem %s24_s28, 512  ;;  %p753_p12 = scmp.lt.s32.totalorder %s24_s28, %s24_s28 }
  0x1b   :  { %p749_p11 = scmp.ne.s32.totalorder %s24_s28, %s748_s17  ;;  %p754_p13 = scmp.lt.s32.totalorder %s748_s17, %s748_s17 }
  0x1d   :  { %p755_p0 = por %p754_p13, %p753_p12 }
  0x1f   :  { %p756_p1 = pnand %p755_p0, %p749_p11 }
  0x21   :  { %759 = shalt.err (!%p756_p1)
}
  0x22   :  { %s814_s4 = smov 256   ;;  %s815_s14 = smov 16  }
  0x23   :  { %29 = dma.hbm_to_vmem [thread:$0]  %s983_s0, 512, %s24_s28, [#allocation3], %s814_s4, %s814_s4, %s815_s14  }
  0x24   :  { %s816_s20 = smov [#allocation7]   ;;  %s760_s24 = scalar_lea.hbm %s991_s8, 2048 }
  0x25   :  { %s59_s21 = sshll.u32 %s816_s20, 4  ;;  %p761_p2 = scmp.ne.s32.totalorder %s991_s8, %s760_s24  ;;  %s60_s21 = int_to_ptr.vmem [resolvable:$true] %s59_s21 }
  0x26   :  { %p764_p3 = scmp.lt.u32.totalorder %s760_s24, %s991_s8 }
  0x28   :  { %p766_p4 = pnand %p764_p3, %p761_p2 }
  0x2a   :  { %769 = shalt.err (!%p766_p4)
}
  0x2b   :  { %s770_s30 = scalar_lea.vmem %s60_s21, 2048  ;;  %p775_p6 = scmp.lt.s32.totalorder %s60_s21, %s60_s21 }
  0x2c   :  { %p771_p5 = scmp.ne.s32.totalorder %s60_s21, %s770_s30  ;;  %p776_p7 = scmp.lt.s32.totalorder %s770_s30, %s770_s30 }
  0x2e   :  { %p777_p8 = por %p776_p7, %p775_p6 }
  0x30   :  { %p778_p9 = pnand %p777_p8, %p771_p5 }
  0x32   :  { %781 = shalt.err (!%p778_p9)
}
  0x33   :  { %s817_s0 = smov 128   ;;  %s818_s28 = smov 8  }
  0x34   :  { %65 = dma.hbm_to_vmem [thread:$0]  %s991_s8, 2048, %s60_s21, [#allocation6], %s817_s0, %s817_s0, %s818_s28  }
  0x35   :  { %804 = dma.done.wait [#allocation3], 512  }
  0x36   :  { %805 = vsyncadd [#allocation3], 4294966784 }
  0x37   :  { %806 = dma.done.wait [#allocation6], 4096  }
  0x38   :  { %807 = vsyncadd [#allocation6], 4294963200  ;;  %v915_v0 = vld [vmem:[#allocation2] sm:$0xff]  ;;  %v917_v1 = vld [vmem:[#allocation2 + $0x8] sm:$0xff]  ;;  %v119_v42 = vlaneseq }
  0x39   :  { %v919_v2 = vld [vmem:[#allocation2 + $0x10] sm:$0xff]  ;;  %v84_v3 = vadd.f32 %v917_v1, %v915_v0  ;;  %v923_v4 = vld [vmem:[#allocation2 + $0x18] sm:$0xff]  ;;  %v652_v6 = vld [vmem:[#allocation5 + $0x40] sm:$0xff]  }
  0x3a   :  { %v87_v5 = vadd.f32 %v923_v4, %v919_v2  ;;  %v653_v7 = vld [vmem:[#allocation5] sm:$0xff]   ;;  %619 = vmatprep.subr.bf16.mxu0 %v652_v6  ;;  %v654_v22 = vld [vmem:[#allocation5 + $0x48] sm:$0xff]   ;;  %v656_v24 = vld [vmem:[#allocation5 + $0x50] sm:$0xff]   ;;  %v120_v45 = vshrl.u32 %v119_v42, 7 }
  0x3b   :  { %85 = vadd.xlane.f32.xlu0 %v84_v3  ;;  %620 = vmatpush3.bf16.msra.mxu0 %v653_v7  ;;  %v655_v23 = vld [vmem:[#allocation5 + $0x8] sm:$0xff]   ;;  %v657_v25 = vld [vmem:[#allocation5 + $0x10] sm:$0xff]   ;;  %v658_v26 = vld [vmem:[#allocation5 + $0x58] sm:$0xff]  }
  0x3c   :  { %621 = vmatprep.subr.bf16.mxu0 %v654_v22  ;;  %v659_v27 = vld [vmem:[#allocation5 + $0x18] sm:$0xff]   ;;  %v660_v28 = vld [vmem:[#allocation5 + $0x60] sm:$0xff]   ;;  %v662_v30 = vld [vmem:[#allocation5 + $0x68] sm:$0xff]   ;;  %v931_v46 = vsub.s32 0, %v120_v45  ;;  %v933_v47 = vsub.s32 1, %v120_v45 }
  0x3d   :  { %v661_v29 = vld [vmem:[#allocation5 + $0x20] sm:$0xff]   ;;  %v663_v31 = vld [vmem:[#allocation5 + $0x28] sm:$0xff]   ;;  %v664_v32 = vld [vmem:[#allocation5 + $0x70] sm:$0xff]  }
  0x3e   :  { %v665_v33 = vld [vmem:[#allocation5 + $0x30] sm:$0xff]   ;;  %v666_v34 = vld [vmem:[#allocation5 + $0x78] sm:$0xff]   ;;  %v82_v48 = vld [vmem:[%s985_s2] sm:$0x3] }
  0x3f   :  { %88 = vadd.xlane.f32.xlu0 %v87_v5  ;;  %622 = vmatpush3.bf16.msra.mxu0 %v655_v23  ;;  %v667_v35 = vld [vmem:[#allocation5 + $0x38] sm:$0xff]   ;;  %v83_v50 = vld [vmem:[%s986_s3] sm:$0x3]  ;;  %v122_v52 = vrot.slane %v82_v48, %v931_v46  ;;  %v126_v53 = vrot.slane %v82_v48, %v933_v47 }
  0x40   :  { %623 = vmatprep.subr.bf16.mxu0 %v656_v24  ;;  %v137_v56 = vrot.slane %v83_v50, %v931_v46  ;;  %v141_v57 = vrot.slane %v83_v50, %v933_v47  ;;  %v689_v42 = vld [vmem:[#allocation7 + $0x74] ss:$8 sps:$4 sm:$0xff]  }
  0x43   :  { %624 = vmatpush3.bf16.msra.mxu0 %v657_v25 }
  0x44   :  { %625 = vmatprep.subr.bf16.mxu0 %v658_v26 }
  0x47   :  { %626 = vmatpush3.bf16.msra.mxu0 %v659_v27 }
  0x48   :  { %627 = vmatprep.subr.bf16.mxu0 %v660_v28 }
  0x4b   :  { %628 = vmatpush3.bf16.msra.mxu0 %v661_v29  ;;  %v671_v29 = vld [vmem:[#allocation7 + $0x14] ss:$8 sps:$4 sm:$0xff]  }
  0x4c   :  { %629 = vmatprep.subr.bf16.mxu0 %v662_v30  ;;  %v673_v30 = vld [vmem:[#allocation7 + $0x10] ss:$8 sps:$4 sm:$0xff]  }
  0x4f   :  { %630 = vmatpush3.bf16.msra.mxu0 %v663_v31  ;;  %v674_v31 = vld [vmem:[#allocation7 + $0x24] ss:$8 sps:$4 sm:$0xff]  }
  0x50   :  { %631 = vmatprep.subr.bf16.mxu0 %v664_v32  ;;  %v676_v32 = vld [vmem:[#allocation7 + $0x20] ss:$8 sps:$4 sm:$0xff]  }
  0x53   :  { %632 = vmatpush3.bf16.msra.mxu0 %v665_v33  ;;  %v677_v33 = vld [vmem:[#allocation7 + $0x34] ss:$8 sps:$4 sm:$0xff]  }
  0x54   :  { %633 = vmatprep.subr.bf16.mxu0 %v666_v34  ;;  %v679_v34 = vld [vmem:[#allocation7 + $0x30] ss:$8 sps:$4 sm:$0xff]  }
  0x57   :  { %634 = vmatpush3.bf16.msra.mxu0 %v667_v35  ;;  %v680_v35 = vld [vmem:[#allocation7 + $0x44] ss:$8 sps:$4 sm:$0xff]  }
  0xc8   :  { %v86_v8 = vpop.xlane.xlu0 %85 }
  0xc9   :  { %v90_v9 = vmul.f32 0.00390625, %v86_v8 }
  0xcb   :  { %v92_v10 = vsub.f32 %v915_v0, %v90_v9  ;;  %v93_v11 = vsub.f32 %v917_v1, %v90_v9 }
  0xcc   :  { %v89_v12 = vpop.xlane.xlu0 %88 }
  0xcd   :  { %v91_v13 = vmul.f32 0.00390625, %v89_v12  ;;  %v96_v14 = vmul.f32 %v92_v10, %v92_v10  ;;  %v97_v15 = vmul.f32 %v93_v11, %v93_v11  ;;  %v584_v12 = vld [vmem:[%s988_s5] ss:$0 sm:$0xff] }
  0xcf   :  { %v94_v16 = vsub.f32 %v919_v2, %v91_v13  ;;  %v95_v17 = vsub.f32 %v923_v4, %v91_v13  ;;  %v100_v18 = vadd.f32 %v97_v15, %v96_v14 }
  0xd1   :  { %101 = vadd.xlane.f32.xlu1 %v100_v18  ;;  %v98_v19 = vmul.f32 %v94_v16, %v94_v16  ;;  %v99_v20 = vmul.f32 %v95_v17, %v95_v17 }
  0xd3   :  { %v103_v21 = vadd.f32 %v99_v20, %v98_v19  ;;  %v668_v19 = vld [vmem:[#allocation7 + $0x4] ss:$8 sps:$4 sm:$0xff]   ;;  %v670_v20 = vld [vmem:[#allocation7] ss:$8 sps:$4 sm:$0xff]  }
  0xd4   :  { %479 = vmatprep.subr.bf16.mxu1 %v668_v19 }
  0xd5   :  { %104 = vadd.xlane.f32.xlu1 %v103_v21  ;;  %480 = vmatpush1.bf16.msra.mxu1 %v670_v20 }
  0xd6   :  { %481 = vmatprep.subr.bf16.mxu1 %v671_v29 }
  0xd9   :  { %482 = vmatpush1.bf16.msra.mxu1 %v673_v30 }
  0xda   :  { %483 = vmatprep.subr.bf16.mxu1 %v674_v31 }
  0xdd   :  { %484 = vmatpush1.bf16.msra.mxu1 %v676_v32 }
  0xde   :  { %485 = vmatprep.subr.bf16.mxu1 %v677_v33 }
  0xe1   :  { %486 = vmatpush1.bf16.msra.mxu1 %v679_v34  ;;  %v542_v34 = vld [vmem:[%s984_s1] sm:$0x3] }
  0xe2   :  { %487 = vmatprep.subr.bf16.mxu1 %v680_v35  ;;  %v547_v35 = vrot.slane %v542_v34, %v931_v46 }
 0x15e   :  { %v102_v36 = vpop.xlane.xlu1 %101 }
 0x15f   :  { %v106_v37 = vmul.f32 0.00390625, %v102_v36  ;;  %v682_v36 = vld [vmem:[#allocation7 + $0x40] ss:$8 sps:$4 sm:$0xff]  }
 0x160   :  { %488 = vmatpush1.bf16.msra.mxu1 %v682_v36  ;;  %v551_v36 = vrot.slane %v542_v34, %v933_v47 }
 0x161   :  { %v108_v38 = vmax.f32 %v106_v37, 0.0  ;;  %v683_v37 = vld [vmem:[#allocation7 + $0x54] ss:$8 sps:$4 sm:$0xff]  }
 0x162   :  { %v105_v39 = vpop.xlane.xlu1 %104  ;;  %489 = vmatprep.subr.bf16.mxu1 %v683_v37 }
 0x163   :  { %v110_v40 = vadd.f32 1e-05, %v108_v38  ;;  %v107_v41 = vmul.f32 0.00390625, %v105_v39  ;;  %v819_v38 = vmov 0   ;;  %v685_v39 = vld [vmem:[#allocation7 + $0x50] ss:$8 sps:$4 sm:$0xff]  }
 0x164   :  { %511 = vmatprep.mubr.bf16.mxu1 %v819_v38  ;;  %490 = vmatpush1.bf16.msra.mxu1 %v685_v39 }
 0x165   :  { %692 = vrsqrt.f32 %v110_v40  ;;  %v109_v43 = vmax.f32 %v107_v41, 0.0  ;;  %v686_v40 = vld [vmem:[#allocation7 + $0x64] ss:$8 sps:$4 sm:$0xff]   ;;  %v688_v41 = vld [vmem:[#allocation7 + $0x60] ss:$8 sps:$4 sm:$0xff]  }
 0x166   :  { %491 = vmatprep.subr.bf16.mxu1 %v686_v40 }
 0x167   :  { %v111_v44 = vadd.f32 1e-05, %v109_v43  ;;  %v691_v43 = vld [vmem:[#allocation7 + $0x70] ss:$8 sps:$4 sm:$0xff]  }
 0x168   :  { %492 = vmatpush1.bf16.msra.mxu1 %v688_v41 }
 0x169   :  { %694 = vrsqrt.f32 %v111_v44  ;;  %493 = vmatprep.subr.bf16.mxu1 %v689_v42 }
 0x16c   :  { %494 = vmatpush1.bf16.msra.mxu1 %v691_v43 }
 0x16f   :  { %v693_v49 = vpop.eup %692 }
 0x170   :  { %v115_v51 = vmul.f32 %v693_v49, %v93_v11  ;;  %v114_v54 = vmul.f32 %v693_v49, %v92_v10 }
 0x172   :  { %v130_v59 = vmul.f32 %v126_v53, %v115_v51  ;;  %v129_v61 = vmul.f32 %v122_v52, %v114_v54 }
 0x173   :  { %v695_v55 = vpop.eup %694 }
 0x174   :  { %v117_v58 = vmul.f32 %v695_v55, %v95_v17  ;;  %v116_v60 = vmul.f32 %v695_v55, %v94_v16  ;;  %v145_v3 = vadd.f32 %v141_v57, %v130_v59  ;;  %v144_v6 = vadd.f32 %v137_v56, %v129_v61  ;;  %v601_v55 = vld [vmem:[%s989_s6] ss:$0 sm:$0xff] }
 0x176   :  { %v132_v62 = vmul.f32 %v126_v53, %v117_v58  ;;  %v131_v63 = vmul.f32 %v122_v52, %v116_v60  ;;  %v602_v58 = vld [vmem:[%s990_s7] ss:$0 sm:$0xff] }
 0x178   :  { %v147_v5 = vadd.f32 %v141_v57, %v132_v62  ;;  %v146_v7 = vadd.f32 %v137_v56, %v131_v63 }
 0x17a   :  { %v149_v8 = vpack.c.bf16 %v147_v5, %v145_v3  ;;  %v148_v9 = vpack.c.bf16 %v146_v7, %v144_v6  ;;  %v387_v7 = vld [vmem:[%s992_s9] sm:$0x3]  ;;  %s820_s9 = smov [#allocation8]  }
 0x17b   :  { %s571_s22 = sshll.u32 %s820_s9, 4  ;;  %s572_s22 = int_to_ptr.vmem [resolvable:$true] %s571_s22 }
 0x17c   :  { %317 = vmatprep.mubr.bf16.mxu0 %v149_v8  ;;  %v392_v8 = vrot.slane %v387_v7, %v931_v46  ;;  %s782_s1 = scalar_lea.vmem %s572_s22, 512  ;;  %p787_p11 = scmp.lt.s32.totalorder %s572_s22, %s572_s22 }
 0x17d   :  { %318 = vmatmul.mubr.bf16.vlgmr.msra.gmra.mrb[0].mxu0 %v148_v9  ;;  %v396_v9 = vrot.slane %v387_v7, %v933_v47  ;;  %p783_p10 = scmp.ne.s32.totalorder %s572_s22, %s782_s1  ;;  %p788_p12 = scmp.lt.s32.totalorder %s782_s1, %s782_s1 }
 0x17f   :  { %p789_p13 = por %p788_p12, %p787_p11 }
 0x181   :  { %p790_p0 = pnand %p789_p13, %p783_p10 }
 0x250   :  { %v635_v10 = vpop.f32.mrb[0].mxu0 }
 0x251   :  { %v636_v11 = vpop.f32.mrb[1].mxu0 }
 0x252   :  { %v637_v13 = vadd.f32 %v636_v11, %v635_v10  ;;  %v638_v14 = vpop.f32.mrb[2].mxu0 }
 0x253   :  { %v639_v15 = vpop.f32.mrb[3].mxu0 }
 0x254   :  { %v640_v16 = vadd.f32 %v639_v15, %v638_v14  ;;  %v320_v17 = vadd.f32 %v637_v13, %v584_v12 }
 0x256   :  { %328 = vadd.xlane.f32.xlu0 %v320_v17  ;;  %v323_v18 = vadd.f32 %v640_v16, %v584_v12 }
 0x258   :  { %330 = vadd.xlane.f32.xlu1 %v323_v18 }
 0x2e3   :  { %v329_v21 = vpop.xlane.xlu0 %328 }
 0x2e4   :  { %v332_v22 = vmul.f32 0.0078125, %v329_v21 }
 0x2e5   :  { %v331_v23 = vpop.xlane.xlu1 %330 }
 0x2e6   :  { %v334_v24 = vsub.f32 %v320_v17, %v332_v22  ;;  %v333_v25 = vmul.f32 0.0078125, %v331_v23 }
 0x2e8   :  { %v335_v26 = vsub.f32 %v323_v18, %v333_v25  ;;  %v336_v27 = vmul.f32 %v334_v24, %v334_v24 }
 0x2ea   :  { %338 = vadd.xlane.f32.xlu0 %v336_v27  ;;  %v337_v28 = vmul.f32 %v335_v26, %v335_v26 }
 0x2ec   :  { %340 = vadd.xlane.f32.xlu1 %v337_v28 }
 0x377   :  { %v339_v44 = vpop.xlane.xlu0 %338 }
 0x378   :  { %v342_v45 = vmul.f32 0.0078125, %v339_v44 }
 0x379   :  { %v341_v48 = vpop.xlane.xlu1 %340 }
 0x37a   :  { %v344_v49 = vmax.f32 %v342_v45, 0.0  ;;  %v343_v50 = vmul.f32 0.0078125, %v341_v48 }
 0x37c   :  { %v346_v51 = vadd.f32 1e-05, %v344_v49  ;;  %v345_v52 = vmax.f32 %v343_v50, 0.0 }
 0x37e   :  { %696 = vrsqrt.f32 %v346_v51  ;;  %v347_v53 = vadd.f32 1e-05, %v345_v52 }
 0x380   :  { %698 = vrsqrt.f32 %v347_v53 }
 0x388   :  { %v697_v54 = vpop.eup %696 }
 0x389   :  { %v350_v56 = vmul.f32 %v697_v54, %v334_v24 }
 0x38a   :  { %v699_v57 = vpop.eup %698 }
 0x38b   :  { %v351_v59 = vmul.f32 %v699_v57, %v335_v26  ;;  %v358_v60 = vmul.f32 %v601_v55, %v350_v56 }
 0x38d   :  { %v359_v61 = vmul.f32 %v601_v55, %v351_v59  ;;  %v366_v62 = vadd.f32 %v602_v58, %v358_v60 }
 0x38f   :  { %v367_v63 = vadd.f32 %v602_v58, %v359_v61  ;;  %v368_v3 = vmax.f32 %v366_v62, 0.0 }
 0x391   :  { %v369_v5 = vmax.f32 %v367_v63, 0.0 }
 0x393   :  { %v370_v6 = vpack.c.bf16 %v369_v5, %v368_v3 }
 0x395   :  { %512 = vmatmul.mubr.bf16.vlgmr.msra.gmra.mrb[0].mxu1 %v370_v6 }
 0x468   :  { %v513_v10 = vpop.f32.mrb[0].mxu1 }
 0x469   :  { %v514_v11 = vadd.f32 %v513_v10, %v392_v8  ;;  %v515_v12 = vpop.f32.mrb[1].mxu1 }
 0x46a   :  { %v516_v13 = vadd.f32 %v515_v12, %v396_v9  ;;  %v517_v14 = vpop.f32.mrb[2].mxu1 }
 0x46b   :  { %v522_v15 = vsub.f32 0.0, %v514_v11  ;;  %v518_v16 = vadd.f32 %v517_v14, %v392_v8  ;;  %v519_v17 = vpop.f32.mrb[3].mxu1 }
 0x46c   :  { %v523_v18 = vsub.f32 0.0, %v516_v13  ;;  %v520_v19 = vadd.f32 %v519_v17, %v396_v9 }
 0x46d   :  { %v526_v20 = vmul.f32 1.442695, %v522_v15  ;;  %v524_v21 = vsub.f32 0.0, %v518_v16 }
 0x46e   :  { %v528_v22 = vmul.f32 1.442695, %v523_v18  ;;  %v525_v23 = vsub.f32 0.0, %v520_v19 }
 0x46f   :  { %700 = vpow2.f32 %v526_v20  ;;  %v530_v24 = vmul.f32 1.442695, %v524_v21 }
 0x470   :  { %702 = vpow2.f32 %v528_v22  ;;  %v532_v25 = vmul.f32 1.442695, %v525_v23 }
 0x471   :  { %704 = vpow2.f32 %v530_v24 }
 0x472   :  { %706 = vpow2.f32 %v532_v25 }
 0x479   :  { %v701_v26 = vpop.eup %700 }
 0x47a   :  { %v703_v27 = vpop.eup %702  ;;  %v534_v28 = vadd.f32 1.0, %v701_v26 }
 0x47b   :  { %v705_v29 = vpop.eup %704  ;;  %v535_v30 = vadd.f32 1.0, %v703_v27 }
 0x47c   :  { %v707_v31 = vpop.eup %706  ;;  %708 = vrcp.f32 %v534_v28  ;;  %v536_v32 = vadd.f32 1.0, %v705_v29 }
 0x47d   :  { %710 = vrcp.f32 %v535_v30  ;;  %v537_v33 = vadd.f32 1.0, %v707_v31 }
 0x47e   :  { %712 = vrcp.f32 %v536_v32 }
 0x47f   :  { %714 = vrcp.f32 %v537_v33 }
 0x486   :  { %v709_v37 = vpop.eup %708 }
 0x487   :  { %v711_v38 = vpop.eup %710  ;;  %v554_v39 = vmul.f32 %v709_v37, %v547_v35 }
 0x488   :  { %v713_v40 = vpop.eup %712  ;;  %v555_v41 = vmul.f32 %v711_v38, %v551_v36 }
 0x489   :  { %v715_v42 = vpop.eup %714  ;;  %v556_v43 = vmul.f32 %v713_v40, %v547_v35  ;;  %v558_v44 = vmul.f32 %v554_v39, %v915_v0 }
 0x48a   :  { %v557_v45 = vmul.f32 %v715_v42, %v551_v36  ;;  %v559_v48 = vmul.f32 %v555_v41, %v917_v1 }
 0x48b   :  { %v560_v49 = vmul.f32 %v556_v43, %v919_v2  ;;  %562 = vst [vmem:[#allocation8] sm:$0xff] %v558_v44 }
 0x48c   :  { %v561_v46 = vmul.f32 %v557_v45, %v923_v4  ;;  %563 = vst [vmem:[#allocation8 + $0x8] sm:$0xff] %v559_v48 }
 0x48d   :  { %564 = vst [vmem:[#allocation8 + $0x10] sm:$0xff] %v560_v49 }
 0x48e   :  { %565 = vst [vmem:[#allocation8 + $0x18] sm:$0xff] %v561_v46 }
 0x48f   :  { %793 = shalt.err (!%p790_p0)
}
 0x490   :  { %s794_s25 = scalar_lea.hbm %s993_s10, 512 }
 0x491   :  { %p795_p1 = scmp.ne.s32.totalorder %s993_s10, %s794_s25  ;;  %p798_p2 = scmp.lt.u32.totalorder %s794_s25, %s993_s10 }
 0x493   :  { %p800_p3 = pnand %p798_p2, %p795_p1 }
 0x495   :  { %803 = shalt.err (!%p800_p3)
}
 0x496   :  { %577 = dma.vmem_to_hbm [thread:$0]  %s572_s22, 512, %s993_s10, [#allocation4], %s814_s4, %s814_s4, %s815_s14  }
 0x497   :  { %808 = dma.done.wait [#allocation4], 512  }
 0x498   :  { %809 = vsyncadd [#allocation4], 4294966784 }
 0x499   :  { %581 = vsyncpa [#allocation3], 1 }
 0x49a   :  { %582 = vsyncpa [#allocation6], 1 }
 0x49b   :  { %583 = vsyncpa [#allocation4], 1 }

</bundles_post_ra>
